<compile_context>
chip_gen: v7x
topology: tpu7x:2x2x1
jax: 0.10.0
libtpu: 0.0.40
codegen_flags: <defaults>
</compile_context>

<pallas_src>
import jax
import jax.numpy as jnp
from jax.experimental import pallas as pl
from jax.experimental.pallas import tpu as pltpu

# ---- small synthetic SMPL sizes ----
N_BATCH = 2
V = 1024          # vertices (real SMPL: 6890 -> pad to a TV multiple)
NB = 10           # shape betas
NJ = 24           # kinematic joints
PF = 207          # pose-blend features = 23 * 9
NBPF = NB + PF    # fused blend feature size = 217
KP = 224          # K padded to a bf16 sublane multiple (217 -> 224)
JOUT = 19         # cocoplus joints
TV = 256          # vertex tile (lane dim); >=2 tiles so v7x uses both cores
NT = V // TV
assert V % TV == 0

VMEM_LIMIT_BYTES = 32 * 1024 * 1024   # sized against v7x's 64 MiB physical VMEM

SMPL_PARENTS = [0, 0, 0, 0, 1, 2, 3, 4, 5, 6, 7, 8,
                9, 9, 9, 12, 13, 14, 16, 17, 18, 19, 20, 21]


# =====================================================================
# Fused Pallas kernel: blendshapes + LBS skinning for one vertex tile.
# =====================================================================
def _smpl_vertex_kernel(feat_ref, bd_ref, vt_ref, w_ref, A_ref, verts_ref):
    n = verts_ref.shape[0]
    tv = verts_ref.shape[2]

    # (1) Fused shape+pose blendshapes: ONE bf16 MXU dot, K=224, lanes are
    #     plane-major within the tile ([x-tile | y-tile | z-tile]).
    vp = jnp.dot(feat_ref[...], bd_ref[0],
                 preferred_element_type=jnp.float32) + vt_ref[0]     # [n, 3*tv]

    # (2) LBS: all per-vertex 4x4 transforms for all batches in one matmul.
    #     A_stacked rows are ordered (b, j, r) so Tt[b*16 + j*4 + r, v] = T[b,v][r,j].
    Tt = jnp.dot(A_ref[...], w_ref[0],
                 preferred_element_type=jnp.float32)                 # [n*16, tv]

    # (3) Homogeneous vertex transform, vectorized over the 3 output rows per
    #     batch via contiguous sublane slices; single full-block store.
    outs = []
    for b in range(n):                                # static unroll, tiny n
        Tb = Tt[16 * b:16 * (b + 1)]                  # [16, tv]
        vx = vp[b:b + 1, 0 * tv:1 * tv]               # [1, tv]
        vy = vp[b:b + 1, 1 * tv:2 * tv]
        vz = vp[b:b + 1, 2 * tv:3 * tv]
        outs.append(Tb[0:3] * vx + Tb[4:7] * vy + Tb[8:11] * vz + Tb[12:15])
    verts_ref[...] = jnp.stack(outs, axis=0)          # [n, 3, tv]


def _smpl_vertex_call(feat_bf16, blend_tiles, vt_tiles, w_tiles, A_stacked):
    n = feat_bf16.shape[0]
    n16 = A_stacked.shape[0]
    return pl.pallas_call(
        _smpl_vertex_kernel,
        out_shape=jax.ShapeDtypeStruct((n, 3, V), jnp.float32),
        grid_spec=pltpu.PrefetchScalarGridSpec(
            num_scalar_prefetch=0,
            grid=(NT,),
            in_specs=[
                pl.BlockSpec((n, KP), lambda v: (0, 0)),             # features
                pl.BlockSpec((1, KP, 3 * TV), lambda v: (v, 0, 0)),  # blenddirs tile (contiguous)
                pl.BlockSpec((1, 1, 3 * TV), lambda v: (v, 0, 0)),   # v_template tile
                pl.BlockSpec((1, NJ, TV), lambda v: (v, 0, 0)),      # skinning weights tile
                pl.BlockSpec((n16, NJ), lambda v: (0, 0)),           # stacked bone transforms
            ],
            out_specs=pl.BlockSpec((n, 3, TV), lambda v: (0, 0, v)),
        ),
        compiler_params=pltpu.CompilerParams(
            dimension_semantics=("parallel",),
            vmem_limit_bytes=VMEM_LIMIT_BYTES),
    )(feat_bf16, blend_tiles, vt_tiles, w_tiles, A_stacked)


# =====================================================================
# Plain-JAX glue (tiny fixed-size math: Rodrigues + kinematic chain)
# =====================================================================
def quat2mat(quat):
    norm_quat = quat / jnp.linalg.norm(quat, axis=1, keepdims=True)
    w, x, y, z = norm_quat[:, 0], norm_quat[:, 1], norm_quat[:, 2], norm_quat[:, 3]
    B = quat.shape[0]
    w2, x2, y2, z2 = w * w, x * x, y * y, z * z
    wx, wy, wz = w * x, w * y, w * z
    xy, xz, yz = x * y, x * z, y * z
    rot = jnp.stack([w2 + x2 - y2 - z2, 2 * xy - 2 * wz, 2 * wy + 2 * xz,
                     2 * wz + 2 * xy, w2 - x2 + y2 - z2, 2 * yz - 2 * wx,
                     2 * xz - 2 * wy, 2 * wx + 2 * yz, w2 - x2 - y2 + z2], axis=1)
    return rot.reshape(B, 3, 3)


def batch_rodrigues(theta):
    l1norm = jnp.linalg.norm(theta + 1e-8, axis=1)
    angle = l1norm[:, None]
    normalized = theta / angle
    angle = angle * 0.5
    quat = jnp.concatenate([jnp.cos(angle), jnp.sin(angle) * normalized], axis=1)
    return quat2mat(quat)


def batch_global_rigid_transformation(Rs, Js, parent):
    # TODO(synk): sequential 24-joint parent recursion kept in plain JAX (no
    # clean Pallas win: data-dependent chain over tiny 4x4 matrices).
    hp = jax.lax.Precision.HIGHEST
    N = Rs.shape[0]
    root_rotation = Rs[:, 0, :, :]
    Js_e = Js[..., None]                                        # [N,24,3,1]

    def make_A(R, t):
        R_homo = jnp.pad(R, ((0, 0), (0, 1), (0, 0)))           # [N,4,3]
        t_homo = jnp.concatenate([t, jnp.ones((N, 1, 1), jnp.float32)], axis=1)
        return jnp.concatenate([R_homo, t_homo], axis=2)        # [N,4,4]

    results = [make_A(root_rotation, Js_e[:, 0])]
    for i in range(1, len(parent)):
        j_here = Js_e[:, i] - Js_e[:, parent[i]]
        A_here = make_A(Rs[:, i], j_here)
        results.append(jnp.matmul(results[parent[i]], A_here, precision=hp))
    results = jnp.stack(results, axis=1)                        # [N,24,4,4]
    new_J = results[:, :, :3, 3]
    Js_w0 = jnp.concatenate([Js_e, jnp.zeros((N, NJ, 1, 1), jnp.float32)], axis=2)
    init_bone = jnp.matmul(results, Js_w0, precision=hp)        # [N,24,4,1]
    init_bone = jnp.pad(init_bone, ((0, 0), (0, 0), (0, 0), (3, 0)))
    A = results - init_bone
    return new_J, A


# =====================================================================
# SMPL forward (fused Pallas hot path + JAX glue)
# =====================================================================
def smpl_forward(params, beta, theta):
    hp = jax.lax.Precision.HIGHEST
    n = beta.shape[0]
    Rs = batch_rodrigues(theta.reshape(-1, 3)).reshape(n, NJ, 3, 3)
    pose_feature = (Rs[:, 1:, :, :] - jnp.eye(3, dtype=jnp.float32)).reshape(n, PF)

    # Hoisted 24-joint regression: J = beta @ (shapedirs@JR) + v_template@JR (tiny).
    J = (jnp.einsum('nb,cbj->njc', beta, params['shape_J'], precision=hp)
         + params['template_J'].T[None])                         # [n, 24, 3]

    _J_transformed, A = batch_global_rigid_transformation(Rs, J, SMPL_PARENTS)
    # Row order (b, j, r): Tt[b*16 + j*4 + r, v] = T[b, v][r, j] inside the kernel.
    A_stacked = jnp.transpose(A, (0, 3, 2, 1)).reshape(n * 16, NJ)

    # Fused blend features [beta | pose_feature | zero-pad to 224] in bf16.
    feat = jnp.concatenate(
        [beta, pose_feature, jnp.zeros((n, KP - NBPF), jnp.float32)],
        axis=1).astype(jnp.bfloat16)

    verts_nc = _smpl_vertex_call(feat, params['blend_tiles'], params['vt_tiles'],
                                 params['w_tiles'], A_stacked)   # [n, 3, V]
    verts = jnp.transpose(verts_nc, (0, 2, 1))                   # [n, V, 3]

    # Hoisted cocoplus joint regression (tiny plain-JAX matmul on planar verts).
    joints = jnp.einsum('ncv,vj->njc', verts_nc, params['joint_regressor'],
                        precision=hp)                            # [n, 19, 3]
    return verts, joints, Rs


# Pure-JAX reference mirroring the PyTorch forward (for correctness check).
def smpl_reference(params, beta, theta):
    hp = jax.lax.Precision.HIGHEST
    n = beta.shape[0]
    shapedirs = jnp.transpose(params['shapedirs_p'], (1, 2, 0)).reshape(NB, V * 3)
    posedirs = jnp.transpose(params['posedirs_p'], (1, 2, 0)).reshape(PF, V * 3)
    v_template = params['v_template_p'].T                        # [V, 3]
    W = params['weights_p'].T                                    # [V, 24]

    v_shaped = jnp.matmul(beta, shapedirs, precision=hp).reshape(n, V, 3) + v_template
    Jx = jnp.matmul(v_shaped[:, :, 0], params['J_regressor'], precision=hp)
    Jy = jnp.matmul(v_shaped[:, :, 1], params['J_regressor'], precision=hp)
    Jz = jnp.matmul(v_shaped[:, :, 2], params['J_regressor'], precision=hp)
    J = jnp.stack([Jx, Jy, Jz], axis=2)
    Rs = batch_rodrigues(theta.reshape(-1, 3)).reshape(n, NJ, 3, 3)
    pose_feature = (Rs[:, 1:, :, :] - jnp.eye(3, dtype=jnp.float32)).reshape(n, PF)
    v_posed = jnp.matmul(pose_feature, posedirs, precision=hp).reshape(n, V, 3) + v_shaped
    _, A = batch_global_rigid_transformation(Rs, J, SMPL_PARENTS)
    T = jnp.matmul(jnp.broadcast_to(W, (n, V, NJ)), A.reshape(n, NJ, 16),
                   precision=hp).reshape(n, V, 4, 4)
    v_posed_homo = jnp.concatenate([v_posed, jnp.ones((n, V, 1), jnp.float32)], axis=2)
    v_homo = jnp.matmul(T, v_posed_homo[..., None], precision=hp)
    verts = v_homo[:, :, :3, 0]
    jx = jnp.matmul(verts[:, :, 0], params['joint_regressor'], precision=hp)
    jy = jnp.matmul(verts[:, :, 1], params['joint_regressor'], precision=hp)
    jz = jnp.matmul(verts[:, :, 2], params['joint_regressor'], precision=hp)
    joints = jnp.stack([jx, jy, jz], axis=2)
    return verts, joints, Rs


# =====================================================================
# Deterministic synthetic parameters (no checkpoint load)
# =====================================================================
def make_params(key):
    hp = jax.lax.Precision.HIGHEST
    ks = jax.random.split(key, 6)
    v_template_p = 0.5 * jax.random.normal(ks[0], (3, V), jnp.float32)
    shapedirs_p = 0.03 * jax.random.normal(ks[1], (3, NB, V), jnp.float32)
    posedirs_p = 0.01 * jax.random.normal(ks[2], (3, PF, V), jnp.float32)
    jr = jax.random.uniform(ks[3], (V, NJ), jnp.float32)
    J_regressor = jr / jnp.sum(jr, axis=0, keepdims=True)
    w = jax.random.uniform(ks[4], (NJ, V), jnp.float32)
    weights_p = w / jnp.sum(w, axis=0, keepdims=True)            # per-vertex sum to 1
    jr2 = jax.random.uniform(ks[5], (V, JOUT), jnp.float32)
    joint_regressor = jr2 / jnp.sum(jr2, axis=0, keepdims=True)

    # ---- derived kernel-side constants (built once, not per forward) ----
    # Fused blend directions, K padded 217 -> 224, tile-major contiguous blocks
    # [NT, KP, 3*TV] in bf16 so each grid step's dominant DMA is one contiguous
    # copy and the kernel does a single [n,224]@[224,3*TV] bf16 MXU dot.
    fused = jnp.concatenate([shapedirs_p, posedirs_p], axis=1)           # [3, 217, V]
    fused = jnp.pad(fused, ((0, 0), (0, KP - NBPF), (0, 0)))             # [3, 224, V]
    blend_tiles = (fused.reshape(3, KP, NT, TV)
                        .transpose(2, 1, 0, 3)
                        .reshape(NT, KP, 3 * TV).astype(jnp.bfloat16))
    # TODO(synk): chip-specific int8 (v5e/v6e) / fp8-e4m3 (v7x) quantization of
    # blend_tiles with post-dot scales would halve this stream again.
    vt_tiles = (v_template_p.reshape(3, NT, TV)
                             .transpose(1, 0, 2)
                             .reshape(NT, 1, 3 * TV))                    # [NT, 1, 3*TV] f32
    w_tiles = weights_p.reshape(NJ, NT, TV).transpose(1, 0, 2)           # [NT, NJ, TV] f32
    # Hoisted 24-joint regression constants (J = beta @ shape_J + template_J).
    shape_J = jnp.einsum('cbv,vj->cbj', shapedirs_p, J_regressor, precision=hp)
    template_J = jnp.einsum('cv,vj->cj', v_template_p, J_regressor, precision=hp)

    return dict(v_template_p=v_template_p, shapedirs_p=shapedirs_p,
                posedirs_p=posedirs_p, J_regressor=J_regressor,
                weights_p=weights_p, joint_regressor=joint_regressor,
                blend_tiles=blend_tiles, vt_tiles=vt_tiles, w_tiles=w_tiles,
                shape_J=shape_J, template_J=template_J)


if __name__ == "__main__":
    key = jax.random.PRNGKey(0)
    kp, kb, kt = jax.random.split(key, 3)
    params = make_params(kp)
    beta = jax.random.normal(kb, (N_BATCH, NB), jnp.float32)
    theta = 0.3 * jax.random.normal(kt, (N_BATCH, NJ * 3), jnp.float32)

    verts, joints, Rs = jax.jit(smpl_forward)(params, beta, theta)
    jax.block_until_ready((verts, joints, Rs))

    v_ref, j_ref, _ = smpl_reference(params, beta, theta)
    assert verts.shape == (N_BATCH, V, 3)
    assert joints.shape == (N_BATCH, JOUT, 3)
    assert Rs.shape == (N_BATCH, NJ, 3, 3)
    assert float(jnp.max(jnp.abs(verts - v_ref))) < 1e-2
    assert float(jnp.max(jnp.abs(joints - j_ref))) < 1e-2
    print("KERNEL_OK")
</pallas_src>

<mosaic_0001>
module attributes {stable_mosaic.version = 11 : i64} {
  func.func @_smpl_vertex_kernel(%arg0: i32, %arg1: memref<2x224xbf16, #tpu.memory_space<vmem>>, %arg2: memref<1x224x768xbf16, #tpu.memory_space<vmem>>, %arg3: memref<1x1x768xf32, #tpu.memory_space<vmem>>, %arg4: memref<1x24x256xf32, #tpu.memory_space<vmem>>, %arg5: memref<32x24xf32, #tpu.memory_space<vmem>>, %arg6: memref<2x3x256xf32, #tpu.memory_space<vmem>>) attributes {dimension_semantics = [#tpu.dimension_semantics<parallel>], iteration_bounds = array<i64: 4>, scalar_prefetch = 0 : i64, scratch_operands = 0 : i64, tpu.core_type = #tpu.core_type<tc>, window_params = [{pipeline_mode = #tpu.pipeline_mode<synchronous>, transform_indices = @transform_0, window_bounds = array<i64: 2, 224>}, {transform_indices = @transform_1, window_bounds = array<i64: 1, 224, 768>}, {transform_indices = @transform_2, window_bounds = array<i64: 1, 1, 768>}, {transform_indices = @transform_3, window_bounds = array<i64: 1, 24, 256>}, {pipeline_mode = #tpu.pipeline_mode<synchronous>, transform_indices = @transform_4, window_bounds = array<i64: 32, 24>}, {transform_indices = @transform_5, window_bounds = array<i64: 2, 3, 256>}]} {
    %c0 = arith.constant 0 : index
    %c0_0 = arith.constant 0 : index
    %0 = vector.load %arg1[%c0, %c0_0] : memref<2x224xbf16, #tpu.memory_space<vmem>>, vector<2x224xbf16>
    %c0_1 = arith.constant 0 : index
    %c0_2 = arith.constant 0 : index
    %c0_3 = arith.constant 0 : index
    %1 = vector.load %arg2[%c0_1, %c0_2, %c0_3] : memref<1x224x768xbf16, #tpu.memory_space<vmem>>, vector<1x224x768xbf16>
    %2 = vector.shape_cast %1 : vector<1x224x768xbf16> to vector<224x768xbf16>
    %cst = arith.constant dense<0.000000e+00> : vector<2x768xf32>
    %3 = tpu.matmul %0, %2, %cst {dimension_numbers = #tpu.dot_dimension_numbers<[1], [0], [0], [1], [0, 0, 1, 1], [], []>} : vector<2x224xbf16>, vector<224x768xbf16>, vector<2x768xf32> -> vector<2x768xf32>
    %c0_4 = arith.constant 0 : index
    %c0_5 = arith.constant 0 : index
    %c0_6 = arith.constant 0 : index
    %4 = vector.load %arg3[%c0_4, %c0_5, %c0_6] : memref<1x1x768xf32, #tpu.memory_space<vmem>>, vector<1x1x768xf32>
    %5 = vector.shape_cast %4 : vector<1x1x768xf32> to vector<1x768xf32>
    %6 = vector.broadcast %5 : vector<1x768xf32> to vector<2x768xf32>
    %7 = arith.addf %3, %6 : vector<2x768xf32>
    %c0_7 = arith.constant 0 : index
    %c0_8 = arith.constant 0 : index
    %8 = vector.load %arg5[%c0_7, %c0_8] : memref<32x24xf32, #tpu.memory_space<vmem>>, vector<32x24xf32>
    %c0_9 = arith.constant 0 : index
    %c0_10 = arith.constant 0 : index
    %c0_11 = arith.constant 0 : index
    %9 = vector.load %arg4[%c0_9, %c0_10, %c0_11] : memref<1x24x256xf32, #tpu.memory_space<vmem>>, vector<1x24x256xf32>
    %10 = vector.shape_cast %9 : vector<1x24x256xf32> to vector<24x256xf32>
    %cst_12 = arith.constant dense<0.000000e+00> : vector<32x256xf32>
    %11 = tpu.matmul %8, %10, %cst_12 {dimension_numbers = #tpu.dot_dimension_numbers<[1], [0], [0], [1], [0, 0, 1, 1], [], []>} : vector<32x24xf32>, vector<24x256xf32>, vector<32x256xf32> -> vector<32x256xf32>
    %12 = vector.extract_strided_slice %11 {offsets = [0, 0], sizes = [16, 256], strides = [1, 1]} : vector<32x256xf32> to vector<16x256xf32>
    %13 = vector.extract_strided_slice %7 {offsets = [0, 0], sizes = [1, 256], strides = [1, 1]} : vector<2x768xf32> to vector<1x256xf32>
    %14 = vector.extract_strided_slice %7 {offsets = [0, 256], sizes = [1, 256], strides = [1, 1]} : vector<2x768xf32> to vector<1x256xf32>
    %15 = vector.extract_strided_slice %7 {offsets = [0, 512], sizes = [1, 256], strides = [1, 1]} : vector<2x768xf32> to vector<1x256xf32>
    %16 = vector.extract_strided_slice %12 {offsets = [0, 0], sizes = [3, 256], strides = [1, 1]} : vector<16x256xf32> to vector<3x256xf32>
    %17 = vector.broadcast %13 : vector<1x256xf32> to vector<3x256xf32>
    %18 = arith.mulf %16, %17 : vector<3x256xf32>
    %19 = vector.extract_strided_slice %12 {offsets = [4, 0], sizes = [3, 256], strides = [1, 1]} : vector<16x256xf32> to vector<3x256xf32>
    %20 = vector.broadcast %14 : vector<1x256xf32> to vector<3x256xf32>
    %21 = arith.mulf %19, %20 : vector<3x256xf32>
    %22 = arith.addf %18, %21 : vector<3x256xf32>
    %23 = vector.extract_strided_slice %12 {offsets = [8, 0], sizes = [3, 256], strides = [1, 1]} : vector<16x256xf32> to vector<3x256xf32>
    %24 = vector.broadcast %15 : vector<1x256xf32> to vector<3x256xf32>
    %25 = arith.mulf %23, %24 : vector<3x256xf32>
    %26 = arith.addf %22, %25 : vector<3x256xf32>
    %27 = vector.extract_strided_slice %12 {offsets = [12, 0], sizes = [3, 256], strides = [1, 1]} : vector<16x256xf32> to vector<3x256xf32>
    %28 = arith.addf %26, %27 : vector<3x256xf32>
    %29 = vector.extract_strided_slice %11 {offsets = [16, 0], sizes = [16, 256], strides = [1, 1]} : vector<32x256xf32> to vector<16x256xf32>
    %30 = vector.extract_strided_slice %7 {offsets = [1, 0], sizes = [1, 256], strides = [1, 1]} : vector<2x768xf32> to vector<1x256xf32>
    %31 = vector.extract_strided_slice %7 {offsets = [1, 256], sizes = [1, 256], strides = [1, 1]} : vector<2x768xf32> to vector<1x256xf32>
    %32 = vector.extract_strided_slice %7 {offsets = [1, 512], sizes = [1, 256], strides = [1, 1]} : vector<2x768xf32> to vector<1x256xf32>
    %33 = vector.extract_strided_slice %29 {offsets = [0, 0], sizes = [3, 256], strides = [1, 1]} : vector<16x256xf32> to vector<3x256xf32>
    %34 = vector.broadcast %30 : vector<1x256xf32> to vector<3x256xf32>
    %35 = arith.mulf %33, %34 : vector<3x256xf32>
    %36 = vector.extract_strided_slice %29 {offsets = [4, 0], sizes = [3, 256], strides = [1, 1]} : vector<16x256xf32> to vector<3x256xf32>
    %37 = vector.broadcast %31 : vector<1x256xf32> to vector<3x256xf32>
    %38 = arith.mulf %36, %37 : vector<3x256xf32>
    %39 = arith.addf %35, %38 : vector<3x256xf32>
    %40 = vector.extract_strided_slice %29 {offsets = [8, 0], sizes = [3, 256], strides = [1, 1]} : vector<16x256xf32> to vector<3x256xf32>
    %41 = vector.broadcast %32 : vector<1x256xf32> to vector<3x256xf32>
    %42 = arith.mulf %40, %41 : vector<3x256xf32>
    %43 = arith.addf %39, %42 : vector<3x256xf32>
    %44 = vector.extract_strided_slice %29 {offsets = [12, 0], sizes = [3, 256], strides = [1, 1]} : vector<16x256xf32> to vector<3x256xf32>
    %45 = arith.addf %43, %44 : vector<3x256xf32>
    %46 = vector.shape_cast %28 : vector<3x256xf32> to vector<1x3x256xf32>
    %47 = vector.shape_cast %45 : vector<3x256xf32> to vector<1x3x256xf32>
    %48 = tpu.concatenate %46, %47 in 0 : vector<1x3x256xf32>, vector<1x3x256xf32> -> vector<2x3x256xf32>
    %c0_13 = arith.constant 0 : index
    %c0_14 = arith.constant 0 : index
    %c0_15 = arith.constant 0 : index
    %49 = vector.load %arg6[%c0_13, %c0_14, %c0_15] : memref<2x3x256xf32, #tpu.memory_space<vmem>>, vector<2x3x256xf32>
    tpu.vector_store %arg6[%c0_13, %c0_14, %c0_15], %48 {strides = array<i32>} : memref<2x3x256xf32, #tpu.memory_space<vmem>>, vector<2x3x256xf32>,
    return
  }
  func.func @transform_0(%arg0: i32) -> (i32, i32) {
    %c0_i32 = arith.constant 0 : i32
    %c0_i32_0 = arith.constant 0 : i32
    %c0_i32_1 = arith.constant 0 : i32
    return %c0_i32, %c0_i32_0 : i32, i32
  }
  func.func @transform_1(%arg0: i32) -> (i32, i32, i32) {
    %c0_i32 = arith.constant 0 : i32
    %c0_i32_0 = arith.constant 0 : i32
    %c0_i32_1 = arith.constant 0 : i32
    return %arg0, %c0_i32, %c0_i32_0 : i32, i32, i32
  }
  func.func @transform_2(%arg0: i32) -> (i32, i32, i32) {
    %c0_i32 = arith.constant 0 : i32
    %c0_i32_0 = arith.constant 0 : i32
    %c0_i32_1 = arith.constant 0 : i32
    return %arg0, %c0_i32, %c0_i32_0 : i32, i32, i32
  }
  func.func @transform_3(%arg0: i32) -> (i32, i32, i32) {
    %c0_i32 = arith.constant 0 : i32
    %c0_i32_0 = arith.constant 0 : i32
    %c0_i32_1 = arith.constant 0 : i32
    return %arg0, %c0_i32, %c0_i32_0 : i32, i32, i32
  }
  func.func @transform_4(%arg0: i32) -> (i32, i32) {
    %c0_i32 = arith.constant 0 : i32
    %c0_i32_0 = arith.constant 0 : i32
    %c0_i32_1 = arith.constant 0 : i32
    return %c0_i32, %c0_i32_0 : i32, i32
  }
  func.func @transform_5(%arg0: i32) -> (i32, i32, i32) {
    %c0_i32 = arith.constant 0 : i32
    %c0_i32_0 = arith.constant 0 : i32
    %c0_i32_1 = arith.constant 0 : i32
    return %c0_i32, %c0_i32_0, %arg0 : i32, i32, i32
  }
}

</mosaic_0001>

<bundles_post_ra>
// kernel: smpl_forward.1
= control target key start
LH: loop header
LB: loop body
LE: loop exit
PB: predicated region body
PF: predicated region fallthrough
CT: control target
= control target key end

     0   :  { %s1605_s18 = smov 0   ;;  %s1607_s19 = smov 0   ;;  %s1829_s0 = inlined_call_operand.vmem [shape: bf16[2,224], index: 0, kind: input, shape index: {}]   ;;  %s1830_s1 = inlined_call_operand.vmem [shape: bf16[4,224,768], index: 1, kind: input, shape index: {}]   ;;  %s1831_s2 = inlined_call_operand.vmem [shape: f32[4,1,768], index: 2, kind: input, shape index: {}]   ;;  %s1832_s3 = inlined_call_operand.vmem [shape: f32[4,24,256], index: 3, kind: input, shape index: {}]   ;;  %s1833_s4 = inlined_call_operand.vmem [shape: f32[32,24], index: 4, kind: input, shape index: {}]   ;;  %s1834_s5 = inlined_call_operand.vmem [shape: f32[2,3,1024], index: 5, kind: output, shape index: {}]  }
   0x1   :  { %s1609_s20 = smov 0  }
   0x2 LB: > { %s1618_s21 = sadd.s32 4294967295, %s1571_s20   ;;  %s1620_s22 = sadd.s32 1, %s1571_s20   ;;  %s1571_s20 = sphi %s1609_s20, %s1838_s20   ;;  %s1567_s19 = sphi %s1607_s19, %s1837_s19   ;;  %s1563_s18 = sphi %s1605_s18, %s1836_s18  }
   0x3   : > { %s139_s23 = ssub.s32 %s1571_s20, %s1620_s22  ;;  %s142_s24 = sadd.s32 1, %s1567_s19 }
   0x4   : > { %p140_p0 = scmp.eq.s32.totalorder %s139_s23, 0  ;;  %p152_p1 = scmp.ne.s32.totalorder %s1567_s19, %s1563_s18 }
   0x5   : > { %p153_p2 = scmp.eq.s32.totalorder %s1618_s21, 3  ;;  %p1288_p3 = scmp.ge.s32.totalorder %s1571_s20, 1 }
   0x6   : > { %s1628_s25 = scalar_select %p140_p0, %s1567_s19, %s142_s24  }
   0x7   : > { %p1630_p4 = por %p153_p2, %p152_p1  ;;  %p206_p5 = scmp.lt.s32.totalorder %s1571_s20, 5 }
   0x9   : > { %p207_p6 = pnand %p1288_p3, %p206_p5 }
   0xa   : > { %p242_p7 = scmp.lt.s32.totalorder (!%p207_p6), %s1618_s21, 3  ;;  %v345_v0 = vlaneseq (!%p207_p6)  ;;  %v1638_v1 = vld.sshfl [vmem:[%s1829_s0] sm:$0x11 pattern:$0x75316420] (!%p207_p6)  ;;  %vm819_vm0 = vcmask (!%p207_p6), 785408  }
   0xb   : > { %210 = sbr.rel (%p207_p6) target bundleno = 370 (0x172), region = 40  ;;  %v1573_v3 = vmov (!%p207_p6), 1966171168   ;;  %v383_v5 = vcombine.high (!%p207_p6), %v1638_v1, %v1638_v1  ;;  %vm956_vm1 = vcmask (!%p207_p6), 195584  }
   0xc   : > { %v1643_v2 = vshrl.u32 (!%p207_p6), %v345_v0, 7  ;;  %v385_v4 = vunpack.c.l.s4 (!%p207_p6), %v1573_v3 }
   0xe   : > { %v386_v6 = vunpack.c.0.s8 (!%p207_p6), %v385_v4 }
  0x10   : > { %v1654_v7 = vsub.s32 (!%p207_p6), %v386_v6, %v1643_v2 }
  0x12   : > { %s1641_s29 = scalar_select %p242_p7, %s1618_s21, 3  ;;  %v1659_v10 = vrot.slane %v383_v5, %v1654_v7 }
  0x14   : > { %s1394_s30 = smul.u32 672, %s1641_s29  ;;  %1377 = vmatprep.mubr.msk.bf16.mxu0 %vm819_vm0, %v1659_v10  ;;  %1378 = vmatprep.mubr.msk.bf16.mxu1 %vm819_vm0, %v1659_v10 }
  0x15   : > { %s1396_s9 = smul.u32 48, %s1641_s29 }
  0x16   : > { %s1651_s8 = scalar_lea.vmem %s1830_s1, %s1394_s30  ;;  %s1395_s27 = smul.u32 6, %s1641_s29 }
  0x17   : > { %v1423_v8 = vld [vmem:[%s1651_s8 + $0x4] ss:$24 sps:$4 sm:$0xff]   ;;  %v1427_v11 = vld [vmem:[%s1651_s8] ss:$24 sps:$4 sm:$0xff]   ;;  %v1429_v13 = vld [vmem:[%s1651_s8 + $0x34] ss:$24 sps:$4 sm:$0xff]   ;;  %s1717_s12 = scalar_lea.vmem %s1832_s3, %s1396_s9 }
  0x18   : > { %v1425_v9 = vld [vmem:[%s1651_s8 + $0xc] ss:$24 sps:$4 sm:$0xff]   ;;  %823 = vmatprep.subr.bf16.mxu0 %v1423_v8  ;;  %v1428_v12 = vld [vmem:[%s1651_s8 + $0x8] ss:$24 sps:$4 sm:$0xff]   ;;  %v1431_v14 = vld [vmem:[%s1651_s8 + $0x3c] ss:$24 sps:$4 sm:$0xff]   ;;  %s250_s6 = scalar_lea.vmem %s1831_s2, %s1395_s27 }
  0x19   : > { %864 = vmatprep.subr.bf16.mxu1 %v1425_v9  ;;  %824 = vmatpush1.bf16.msra.mxu0 %v1427_v11  ;;  %v1433_v15 = vld [vmem:[%s1651_s8 + $0x30] ss:$24 sps:$4 sm:$0xff]   ;;  %v1435_v17 = vld [vmem:[%s1651_s8 + $0x64] ss:$24 sps:$4 sm:$0xff]   ;;  %v1439_v19 = vld [vmem:[%s1651_s8 + $0x60] ss:$24 sps:$4 sm:$0xff]   ;;  %v1732_v11 = vrot.slane %v1638_v1, %v1654_v7 }
  0x1a   : > { %865 = vmatpush1.bf16.msra.mxu1 %v1428_v12  ;;  %825 = vmatprep.subr.bf16.mxu0 %v1429_v13  ;;  %v1434_v16 = vld [vmem:[%s1651_s8 + $0x38] ss:$24 sps:$4 sm:$0xff]   ;;  %v1437_v18 = vld [vmem:[%s1651_s8 + $0x6c] ss:$24 sps:$4 sm:$0xff]   ;;  %v1440_v20 = vld [vmem:[%s1651_s8 + $0x68] ss:$24 sps:$4 sm:$0xff]  }
  0x1b   : > { %866 = vmatprep.subr.bf16.mxu1 %v1431_v14  ;;  %v1441_v21 = vld [vmem:[%s1651_s8 + $0x94] ss:$24 sps:$4 sm:$0xff]   ;;  %v1445_v23 = vld [vmem:[%s1651_s8 + $0x90] ss:$24 sps:$4 sm:$0xff]   ;;  %v1447_v25 = vld [vmem:[%s1651_s8 + $0xc4] ss:$24 sps:$4 sm:$0xff]  }
  0x1c   : > { %v1443_v22 = vld [vmem:[%s1651_s8 + $0x9c] ss:$24 sps:$4 sm:$0xff]   ;;  %v1446_v24 = vld [vmem:[%s1651_s8 + $0x98] ss:$24 sps:$4 sm:$0xff]   ;;  %v1449_v26 = vld [vmem:[%s1651_s8 + $0xcc] ss:$24 sps:$4 sm:$0xff]  }
  0x1d   : > { %826 = vmatpush1.bf16.msra.mxu0 %v1433_v15  ;;  %v1451_v27 = vld [vmem:[%s1651_s8 + $0xc0] ss:$24 sps:$4 sm:$0xff]   ;;  %v1453_v29 = vld [vmem:[%s1651_s8 + $0xf4] ss:$24 sps:$4 sm:$0xff]   ;;  %v1457_v31 = vld [vmem:[%s1651_s8 + $0xf0] ss:$24 sps:$4 sm:$0xff]  }
  0x1e   : > { %867 = vmatpush1.bf16.msra.mxu1 %v1434_v16  ;;  %827 = vmatprep.subr.bf16.mxu0 %v1435_v17  ;;  %v1452_v28 = vld [vmem:[%s1651_s8 + $0xc8] ss:$24 sps:$4 sm:$0xff]   ;;  %v1455_v30 = vld [vmem:[%s1651_s8 + $0xfc] ss:$24 sps:$4 sm:$0xff]   ;;  %v1458_v32 = vld [vmem:[%s1651_s8 + $0xf8] ss:$24 sps:$4 sm:$0xff]  }
  0x1f   : > { %868 = vmatprep.subr.bf16.mxu1 %v1437_v18  ;;  %v1459_v33 = vld [vmem:[%s1651_s8 + $0x124] ss:$24 sps:$4 sm:$0xff]   ;;  %v1463_v35 = vld [vmem:[%s1651_s8 + $0x120] ss:$24 sps:$4 sm:$0xff]   ;;  %v1465_v37 = vld [vmem:[%s1651_s8 + $0x154] ss:$24 sps:$4 sm:$0xff]  }
  0x20   : > { %v1461_v34 = vld [vmem:[%s1651_s8 + $0x12c] ss:$24 sps:$4 sm:$0xff]   ;;  %v1464_v36 = vld [vmem:[%s1651_s8 + $0x128] ss:$24 sps:$4 sm:$0xff]   ;;  %v1467_v38 = vld [vmem:[%s1651_s8 + $0x15c] ss:$24 sps:$4 sm:$0xff]  }
  0x21   : > { %828 = vmatpush1.bf16.msra.mxu0 %v1439_v19  ;;  %v1469_v39 = vld [vmem:[%s1651_s8 + $0x150] ss:$24 sps:$4 sm:$0xff]   ;;  %v1471_v41 = vld [vmem:[%s1651_s8 + $0x184] ss:$24 sps:$4 sm:$0xff]   ;;  %v1475_v43 = vld [vmem:[%s1651_s8 + $0x180] ss:$24 sps:$4 sm:$0xff]  }
  0x22   : > { %869 = vmatpush1.bf16.msra.mxu1 %v1440_v20  ;;  %829 = vmatprep.subr.bf16.mxu0 %v1441_v21  ;;  %v1470_v40 = vld [vmem:[%s1651_s8 + $0x158] ss:$24 sps:$4 sm:$0xff]   ;;  %v1473_v42 = vld [vmem:[%s1651_s8 + $0x18c] ss:$24 sps:$4 sm:$0xff]   ;;  %v1476_v44 = vld [vmem:[%s1651_s8 + $0x188] ss:$24 sps:$4 sm:$0xff]  }
  0x23   : > { %870 = vmatprep.subr.bf16.mxu1 %v1443_v22  ;;  %v1477_v45 = vld [vmem:[%s1651_s8 + $0x1b4] ss:$24 sps:$4 sm:$0xff]   ;;  %v1481_v47 = vld [vmem:[%s1651_s8 + $0x1b0] ss:$24 sps:$4 sm:$0xff]   ;;  %v1483_v49 = vld [vmem:[%s1651_s8 + $0x1e4] ss:$24 sps:$4 sm:$0xff]  }
  0x24   : > { %v1479_v46 = vld [vmem:[%s1651_s8 + $0x1bc] ss:$24 sps:$4 sm:$0xff]   ;;  %v1482_v48 = vld [vmem:[%s1651_s8 + $0x1b8] ss:$24 sps:$4 sm:$0xff]   ;;  %v1485_v50 = vld [vmem:[%s1651_s8 + $0x1ec] ss:$24 sps:$4 sm:$0xff]  }
  0x25   : > { %830 = vmatpush1.bf16.msra.mxu0 %v1445_v23  ;;  %v1487_v51 = vld [vmem:[%s1651_s8 + $0x1e0] ss:$24 sps:$4 sm:$0xff]   ;;  %v1489_v53 = vld [vmem:[%s1651_s8 + $0x214] ss:$24 sps:$4 sm:$0xff]   ;;  %v1493_v55 = vld [vmem:[%s1651_s8 + $0x210] ss:$24 sps:$4 sm:$0xff]  }
  0x26   : > { %871 = vmatpush1.bf16.msra.mxu1 %v1446_v24  ;;  %831 = vmatprep.subr.bf16.mxu0 %v1447_v25  ;;  %v1488_v52 = vld [vmem:[%s1651_s8 + $0x1e8] ss:$24 sps:$4 sm:$0xff]   ;;  %v1491_v54 = vld [vmem:[%s1651_s8 + $0x21c] ss:$24 sps:$4 sm:$0xff]   ;;  %v1494_v56 = vld [vmem:[%s1651_s8 + $0x218] ss:$24 sps:$4 sm:$0xff]  }
  0x27   : > { %872 = vmatprep.subr.bf16.mxu1 %v1449_v26  ;;  %v1495_v57 = vld [vmem:[%s1651_s8 + $0x244] ss:$24 sps:$4 sm:$0xff]   ;;  %v1499_v59 = vld [vmem:[%s1651_s8 + $0x240] ss:$24 sps:$4 sm:$0xff]   ;;  %v1501_v61 = vld [vmem:[%s1651_s8 + $0x274] ss:$24 sps:$4 sm:$0xff]  }
  0x28   : > { %v1497_v58 = vld [vmem:[%s1651_s8 + $0x24c] ss:$24 sps:$4 sm:$0xff]   ;;  %v1500_v60 = vld [vmem:[%s1651_s8 + $0x248] ss:$24 sps:$4 sm:$0xff]   ;;  %v1503_v62 = vld [vmem:[%s1651_s8 + $0x27c] ss:$24 sps:$4 sm:$0xff]  }
  0x29   : > { %832 = vmatpush1.bf16.msra.mxu0 %v1451_v27  ;;  %v951_v63 = vld [vmem:[%s1717_s12 + $0x8] sm:$0xff]  ;;  %v953_v0 = vld [vmem:[%s1717_s12 + $0x18] sm:$0xff]  ;;  %v950_v8 = vld [vmem:[%s1717_s12] sm:$0xff]  ;;  %v1574_v17 = vmov 0.0   ;;  %s239_s29 = sand.u32 1, %s1563_s18   ;;  %s1389_s18 = sshll.u32 (%p1630_p4), %s1618_s21, 3 }
  0x2a   : > { %873 = vmatpush1.bf16.msra.mxu1 %v1452_v28  ;;  %833 = vmatprep.subr.bf16.mxu0 %v1453_v29  ;;  %v1505_v3 = vld [vmem:[%s1651_s8 + $0x270] ss:$24 sps:$4 sm:$0xff]   ;;  %v1509_v5 = vld [vmem:[%s1651_s8 + $0x14] ss:$24 sps:$4 sm:$0xff]   ;;  %v1390_v6 = vpack.c.bf16 %v953_v0, %v951_v63  ;;  %v1512_v14 = vld [vmem:[%s1651_s8 + $0x44] ss:$24 sps:$4 sm:$0xff]   ;;  %s1173_s11 = scalar_lea.vmem (%p1630_p4), %s1834_s5, %s1389_s18 }
  0x2b   : > { %874 = vmatprep.subr.bf16.mxu1 %v1455_v30  ;;  %v1506_v4 = vld [vmem:[%s1651_s8 + $0x278] ss:$24 sps:$4 sm:$0xff]   ;;  %v955_v15 = vld [vmem:[%s1717_s12 + $0x28] sm:$0xff]  ;;  %v954_v7 = vld [vmem:[%s1717_s12 + $0x20] sm:$0xff]  ;;  %s1289_s7 = sshll.u32 %s239_s29, 4 }
  0x2c   : > { %v952_v9 = vld [vmem:[%s1717_s12 + $0x10] sm:$0xff]  ;;  %v1510_v1 = vld [vmem:[%s1651_s8 + $0x40] ss:$24 sps:$4 sm:$0xff]   ;;  %v1518_v20 = vld [vmem:[%s1651_s8 + $0xa4] ss:$24 sps:$4 sm:$0xff]  }
  0x2d   : > { %834 = vmatpush1.bf16.msra.mxu0 %v1457_v31  ;;  %v1507_v12 = vld [vmem:[%s1651_s8 + $0x10] ss:$24 sps:$4 sm:$0xff]   ;;  %v1392_v13 = vpack.c.bf16 %v952_v9, %v950_v8  ;;  %v1515_v16 = vld [vmem:[%s1651_s8 + $0x74] ss:$24 sps:$4 sm:$0xff]   ;;  %v946_v19 = vld [vmem:[%s1833_s4] sm:$0xff] }
  0x2e   : > { %875 = vmatpush1.bf16.msra.mxu1 %v1458_v32  ;;  %835 = vmatprep.subr.bf16.mxu0 %v1459_v33  ;;  %v1513_v18 = vld [vmem:[%s1651_s8 + $0x70] ss:$24 sps:$4 sm:$0xff]   ;;  %v1516_v21 = vld [vmem:[%s1651_s8 + $0xa0] ss:$24 sps:$4 sm:$0xff]   ;;  %v1521_v22 = vld [vmem:[%s1651_s8 + $0xd4] ss:$24 sps:$4 sm:$0xff]  }
  0x2f   : > { %876 = vmatprep.subr.bf16.mxu1 %v1461_v34  ;;  %v1519_v23 = vld [vmem:[%s1651_s8 + $0xd0] ss:$24 sps:$4 sm:$0xff]   ;;  %v1524_v25 = vld [vmem:[%s1651_s8 + $0x104] ss:$24 sps:$4 sm:$0xff]   ;;  %v1522_v26 = vld [vmem:[%s1651_s8 + $0x100] ss:$24 sps:$4 sm:$0xff]  }
  0x30   : > { %v948_v24 = vld [vmem:[%s1833_s4 + $0x10] sm:$0xff]  ;;  %v949_v27 = vld [vmem:[%s1833_s4 + $0x18] sm:$0xff] }
  0x31   : > { %836 = vmatpush1.bf16.msra.mxu0 %v1463_v35  ;;  %v1527_v28 = vld [vmem:[%s1651_s8 + $0x134] ss:$24 sps:$4 sm:$0xff]   ;;  %v1525_v29 = vld [vmem:[%s1651_s8 + $0x130] ss:$24 sps:$4 sm:$0xff]   ;;  %v1530_v30 = vld [vmem:[%s1651_s8 + $0x164] ss:$24 sps:$4 sm:$0xff]  }
  0x32   : > { %877 = vmatpush1.bf16.msra.mxu1 %v1464_v36  ;;  %837 = vmatprep.subr.bf16.mxu0 %v1465_v37  ;;  %v1528_v31 = vld [vmem:[%s1651_s8 + $0x160] ss:$24 sps:$4 sm:$0xff]   ;;  %v1533_v32 = vld [vmem:[%s1651_s8 + $0x194] ss:$24 sps:$4 sm:$0xff]   ;;  %v1531_v33 = vld [vmem:[%s1651_s8 + $0x190] ss:$24 sps:$4 sm:$0xff]  }
  0x33   : > { %878 = vmatprep.subr.bf16.mxu1 %v1467_v38  ;;  %v1536_v34 = vld [vmem:[%s1651_s8 + $0x1c4] ss:$24 sps:$4 sm:$0xff]   ;;  %v1534_v35 = vld [vmem:[%s1651_s8 + $0x1c0] ss:$24 sps:$4 sm:$0xff]   ;;  %v1539_v36 = vld [vmem:[%s1651_s8 + $0x1f4] ss:$24 sps:$4 sm:$0xff]  }
  0x34   : > { %v1537_v37 = vld [vmem:[%s1651_s8 + $0x1f0] ss:$24 sps:$4 sm:$0xff]   ;;  %v1542_v38 = vld [vmem:[%s1651_s8 + $0x224] ss:$24 sps:$4 sm:$0xff]  }
  0x35   : > { %838 = vmatpush1.bf16.msra.mxu0 %v1469_v39  ;;  %v1540_v39 = vld [vmem:[%s1651_s8 + $0x220] ss:$24 sps:$4 sm:$0xff]  }
  0x36   : > { %879 = vmatpush1.bf16.msra.mxu1 %v1470_v40  ;;  %839 = vmatprep.subr.bf16.mxu0 %v1471_v41  ;;  %v1545_v40 = vld [vmem:[%s1651_s8 + $0x254] ss:$24 sps:$4 sm:$0xff]   ;;  %v1543_v41 = vld [vmem:[%s1651_s8 + $0x250] ss:$24 sps:$4 sm:$0xff]  }
  0x37   : > { %880 = vmatprep.subr.bf16.mxu1 %v1473_v42  ;;  %v1548_v42 = vld [vmem:[%s1651_s8 + $0x284] ss:$24 sps:$4 sm:$0xff]  }
  0x39   : > { %840 = vmatpush1.bf16.msra.mxu0 %v1475_v43  ;;  %v1546_v43 = vld [vmem:[%s1651_s8 + $0x280] ss:$24 sps:$4 sm:$0xff]   ;;  %s241_s8 = scalar_lea.vmem [#allocation2], %s1289_s7 }
  0x3a   : > { %881 = vmatpush1.bf16.msra.mxu1 %v1476_v44  ;;  %841 = vmatprep.subr.bf16.mxu0 %v1477_v45  ;;  %v1789_v44 = vsub.s32 0, %v1643_v2  ;;  %v355_v45 = vsub.s32 2, %v1643_v2 }
  0x3b   : > { %882 = vmatprep.subr.bf16.mxu1 %v1479_v46  ;;  %v343_v46 = vld [vmem:[%s250_s6] sm:$0x3f] }
  0x3d   : > { %842 = vmatpush1.bf16.msra.mxu0 %v1481_v47  ;;  %v1793_v47 = vsub.s32 1, %v1643_v2 }
  0x3e   : > { %883 = vmatpush1.bf16.msra.mxu1 %v1482_v48  ;;  %843 = vmatprep.subr.bf16.mxu0 %v1483_v49  ;;  %v359_v48 = vsub.s32 3, %v1643_v2  ;;  %v348_v49 = vrot.slane %v343_v46, %v1789_v44 }
  0x3f   : > { %884 = vmatprep.subr.bf16.mxu1 %v1485_v50  ;;  %v356_v50 = vrot.slane %v343_v46, %v355_v45 }
  0x41   : > { %844 = vmatpush1.bf16.msra.mxu0 %v1487_v51  ;;  %v352_v51 = vrot.slane %v343_v46, %v1793_v47 }
  0x42   : > { %885 = vmatpush1.bf16.msra.mxu1 %v1488_v52  ;;  %845 = vmatprep.subr.bf16.mxu0 %v1489_v53  ;;  %v360_v52 = vrot.slane %v343_v46, %v359_v48 }
  0x43   : > { %886 = vmatprep.subr.bf16.mxu1 %v1491_v54 }
  0x45   : > { %846 = vmatpush1.bf16.msra.mxu0 %v1493_v55 }
  0x46   : > { %887 = vmatpush1.bf16.msra.mxu1 %v1494_v56  ;;  %847 = vmatprep.subr.bf16.mxu0 %v1495_v57 }
  0x47   : > { %888 = vmatprep.subr.bf16.mxu1 %v1497_v58 }
  0x49   : > { %848 = vmatpush1.bf16.msra.mxu0 %v1499_v59 }
  0x4a   : > { %889 = vmatpush1.bf16.msra.mxu1 %v1500_v60  ;;  %849 = vmatprep.subr.bf16.mxu0 %v1501_v61 }
  0x4b   : > { %890 = vmatprep.subr.bf16.mxu1 %v1503_v62 }
  0x4d   : > { %850 = vmatpush1.bf16.msra.mxu0 %v1505_v3 }
  0x4e   : > { %891 = vmatpush1.bf16.msra.mxu1 %v1506_v4  ;;  %905 = vmatprep.subr.bf16.mxu0 %v1509_v5 }
  0x4f   : > { %1391 = vmatprep.subr.bf16.mxu1 %v1390_v6 }
  0x50   : > { %856 = vmatmul.mubr.bf16.vlgmr.msra.gmra.mrb[0].mxu0 %v1732_v11 }
  0x51   : > { %897 = vmatmul.mubr.bf16.vlgmr.msra.gmra.mrb[0].mxu1 %v1732_v11  ;;  %906 = vmatpush1.bf16.msra.mxu0 %v1507_v12 }
  0x52   : > { %1393 = vmatpush1.bf16.msra.mxu1 %v1392_v13  ;;  %907 = vmatprep.subr.bf16.mxu0 %v1512_v14 }
  0x53   : > { %973 = vmatprep.subr.mxu1 %v955_v15  ;;  %1033 = vmatprep.mubr.f32.mxu1 %v1574_v17 }
  0x54   : > { %1379 = vmatprep.mubr.msk.bf16.mxu0 %vm819_vm0, %v1659_v10  ;;  %v947_v10 = vld [vmem:[%s1833_s4 + $0x8] sm:$0xff] }
  0x55   : > { %908 = vmatpush1.bf16.msra.mxu0 %v1510_v1 }
  0x56   : > { %974 = vmatpush1.msra.mxu1 %v954_v7  ;;  %909 = vmatprep.subr.bf16.mxu0 %v1515_v16 }
  0x59   : > { %1380 = vmatmul.mubr.msk.f32.vlgmr.msra.gmra.mrb[4].mxu1 %vm956_vm1, %v946_v19  ;;  %910 = vmatpush1.bf16.msra.mxu0 %v1513_v18 }
  0x5a   : > { %1039 = vmatprep.mubr.f32.mxu1 %v1574_v17  ;;  %911 = vmatprep.subr.bf16.mxu0 %v1518_v20 }
  0x5d   : > { %1381 = vmatmul.mubr.msk.f32.gmra.mrb[6].mxu1 %vm956_vm1, %v947_v10  ;;  %912 = vmatpush1.bf16.msra.mxu0 %v1516_v21 }
  0x5e   : > { %1045 = vmatprep.mubr.f32.mxu1 %v1574_v17  ;;  %913 = vmatprep.subr.bf16.mxu0 %v1521_v22 }
  0x61   : > { %1382 = vmatmul.mubr.msk.f32.gmra.mrb[8].mxu1 %vm956_vm1, %v948_v24  ;;  %914 = vmatpush1.bf16.msra.mxu0 %v1519_v23 }
  0x62   : > { %1051 = vmatprep.mubr.f32.mxu1 %v1574_v17  ;;  %915 = vmatprep.subr.bf16.mxu0 %v1524_v25 }
  0x65   : > { %1383 = vmatmul.mubr.msk.f32.gmra.mrb[10].mxu1 %vm956_vm1, %v949_v27  ;;  %916 = vmatpush1.bf16.msra.mxu0 %v1522_v26 }
  0x66   : > { %917 = vmatprep.subr.bf16.mxu0 %v1527_v28 }
  0x69   : > { %918 = vmatpush1.bf16.msra.mxu0 %v1525_v29 }
  0x6a   : > { %919 = vmatprep.subr.bf16.mxu0 %v1530_v30 }
  0x6d   : > { %920 = vmatpush1.bf16.msra.mxu0 %v1528_v31 }
  0x6e   : > { %921 = vmatprep.subr.bf16.mxu0 %v1533_v32 }
  0x71   : > { %922 = vmatpush1.bf16.msra.mxu0 %v1531_v33 }
  0x72   : > { %923 = vmatprep.subr.bf16.mxu0 %v1536_v34  ;;  %v363_v34 = vsub.s32 4, %v1643_v2 }
  0x75   : > { %924 = vmatpush1.bf16.msra.mxu0 %v1534_v35  ;;  %v367_v35 = vsub.s32 5, %v1643_v2 }
  0x76   : > { %925 = vmatprep.subr.bf16.mxu0 %v1539_v36  ;;  %v364_v36 = vrot.slane %v343_v46, %v363_v34 }
  0x79   : > { %926 = vmatpush1.bf16.msra.mxu0 %v1537_v37  ;;  %v368_v37 = vrot.slane %v343_v46, %v367_v35 }
  0x7a   : > { %927 = vmatprep.subr.bf16.mxu0 %v1542_v38 }
  0x7d   : > { %928 = vmatpush1.bf16.msra.mxu0 %v1540_v39 }
  0x7e   : > { %929 = vmatprep.subr.bf16.mxu0 %v1545_v40 }
  0x81   : > { %930 = vmatpush1.bf16.msra.mxu0 %v1543_v41 }
  0x82   : > { %931 = vmatprep.subr.bf16.mxu0 %v1548_v42 }
  0x85   : > { %932 = vmatpush1.bf16.msra.mxu0 %v1546_v43 }
  0x88   : > { %938 = vmatmul.mubr.bf16.vlgmr.msra.gmra.mrb[4].mxu0 %v1732_v11 }
 0x123   : > { %v857_v53 = vpop.f32.mrb[0].mxu0 }
 0x124   : > { %v898_v54 = vpop.f32.mrb[0].mxu1  ;;  %v858_v55 = vadd.f32 %v857_v53, %v348_v49  ;;  %v859_v56 = vpop.f32.mrb[1].mxu0 }
 0x125   : > { %v899_v57 = vadd.f32 %v898_v54, %v356_v50  ;;  %v900_v58 = vpop.f32.mrb[1].mxu1  ;;  %v860_v59 = vadd.f32 %v859_v56, %v352_v51  ;;  %v861_v60 = vpop.f32.mrb[2].mxu0 }
 0x126   : > { %v901_v61 = vadd.f32 %v900_v58, %v360_v52  ;;  %v902_v62 = vpop.f32.mrb[2].mxu1  ;;  %v862_v63 = vpop.f32.mrb[3].mxu0  ;;  %v1061_v5 = vrot.slane %v858_v55, %v1789_v44  ;;  %v1109_v21 = vrot.slane %v858_v55, %v1793_v47 }
 0x127   : > { %v903_v0 = vpop.f32.mrb[3].mxu1  ;;  %v1071_v3 = vrot.slane %v899_v57, %v1789_v44  ;;  %v1065_v6 = vrot.slane %v860_v59, %v1789_v44  ;;  %v1119_v16 = vrot.slane %v899_v57, %v1793_v47  ;;  %v1113_v10 = vrot.slane %v860_v59, %v1793_v47 }
 0x128   : > { %v1075_v4 = vrot.slane %v901_v61, %v1789_v44  ;;  %v1123_v19 = vrot.slane %v901_v61, %v1793_v47 }
 0x12c   : > { %v1035_v8 = vpop.f32.mrb[4].mxu1 }
 0x12d   : > { %v1066_v9 = vmul.f32 %v1061_v5, %v1035_v8  ;;  %v1076_v11 = vmul.f32 %v1071_v3, %v1035_v8  ;;  %v1037_v12 = vpop.f32.mrb[5].mxu1 }
 0x12e   : > { %v1067_v13 = vmul.f32 %v1065_v6, %v1037_v12  ;;  %v1077_v14 = vmul.f32 %v1075_v4, %v1037_v12 }
 0x12f   : > { %v1080_v15 = vrot.slane %v1076_v11, 4 }
 0x130   : > { %v1081_v1 = vrot.slane %v1077_v14, 4  ;;  %v1041_v7 = vpop.f32.mrb[6].mxu1 }
 0x131   : > { %v1084_v17 = vadd.f32 %v1080_v15, %v1066_v9  ;;  %v1043_v18 = vpop.f32.mrb[7].mxu1  ;;  %v1100_v46 = vrot.slane %v1041_v7, 4 }
 0x132   : > { %v1085_v20 = vadd.f32 %v1081_v1, %v1067_v13  ;;  %v1101_v57 = vrot.slane %v1043_v18, 4 }
 0x134   : > { %v1047_v22 = vpop.f32.mrb[8].mxu1 }
 0x135   : > { %v1114_v23 = vmul.f32 %v1109_v21, %v1047_v22  ;;  %v1124_v24 = vmul.f32 %v1119_v16, %v1047_v22  ;;  %v1049_v25 = vpop.f32.mrb[9].mxu1 }
 0x136   : > { %v1115_v26 = vmul.f32 %v1113_v10, %v1049_v25  ;;  %v1125_v27 = vmul.f32 %v1123_v19, %v1049_v25 }
 0x137   : > { %v1128_v28 = vrot.slane %v1124_v24, 4 }
 0x138   : > { %v1129_v29 = vrot.slane %v1125_v27, 4  ;;  %v1053_v30 = vpop.f32.mrb[10].mxu1 }
 0x139   : > { %v1132_v31 = vadd.f32 %v1128_v28, %v1114_v23  ;;  %v1055_v32 = vpop.f32.mrb[11].mxu1  ;;  %v1148_v56 = vrot.slane %v1053_v30, 4 }
 0x13a   : > { %v1133_v33 = vadd.f32 %v1129_v29, %v1115_v26  ;;  %v1149_v60 = vrot.slane %v1055_v32, 4 }
 0x15b   : > { %v939_v38 = vpop.f32.mrb[4].mxu0 }
 0x15c   : > { %v940_v39 = vadd.f32 %v939_v38, %v364_v36  ;;  %v941_v40 = vpop.f32.mrb[5].mxu0 }
 0x15d   : > { %v942_v41 = vadd.f32 %v941_v40, %v368_v37  ;;  %v943_v42 = vpop.f32.mrb[6].mxu0 }
 0x15e   : > { %v1089_v43 = vrot.slane %v940_v39, %v1789_v44  ;;  %v1137_v45 = vrot.slane %v940_v39, %v1793_v47  ;;  %v944_v48 = vpop.f32.mrb[7].mxu0 }
 0x15f   : > { %v1093_v49 = vrot.slane %v942_v41, %v1789_v44  ;;  %v1141_v50 = vrot.slane %v942_v41, %v1793_v47 }
 0x160   : > { %v1094_v51 = vmul.f32 %v1089_v43, %v1041_v7  ;;  %v1142_v52 = vmul.f32 %v1137_v45, %v1053_v30 }
 0x161   : > { %v1095_v2 = vmul.f32 %v1093_v49, %v1043_v18  ;;  %v1143_v53 = vmul.f32 %v1141_v50, %v1055_v32 }
 0x162   : > { %v1096_v54 = vadd.f32 %v1094_v51, %v1084_v17  ;;  %v1144_v55 = vadd.f32 %v1142_v52, %v1132_v31 }
 0x163   : > { %v1097_v58 = vadd.f32 %v1095_v2, %v1085_v20  ;;  %v1145_v59 = vadd.f32 %v1143_v53, %v1133_v33  ;;  %1170 = sbr.rel (!%p1630_p4) target bundleno = 370 (0x172), region = 44 }
 0x164   : > { %v1104_v61 = vadd.f32 %v1100_v46, %v1096_v54  ;;  %v1152_v62 = vadd.f32 %v1148_v56, %v1144_v55 }
 0x165   : > { %v1105_v63 = vadd.f32 %v1101_v57, %v1097_v58  ;;  %v1153_v44 = vadd.f32 %v1149_v60, %v1145_v59 }
 0x167   : > { %v1158_v0 = vcombine.low %v1104_v61, %v1105_v63  ;;  %v1159_v47 = vcombine.low %v1152_v62, %v1153_v44 }
 0x169   : > { %1162 = vst [vmem:[%s241_s8] sm:$0x77] %v1158_v0  ;;  %1163 = vst [vmem:[%s241_s8 + $0x8] sm:$0x77] %v1159_v47 }
 0x170   : > { %v1203_v3 = vld [vmem:[%s241_s8] sm:$0xff]  ;;  %v1205_v4 = vld [vmem:[%s241_s8 + $0x8] sm:$0xff] }
 0x171   : > { %1204 = vst [vmem:[%s1173_s11] sm:$0xff] %v1203_v3  ;;  %1206 = vst [vmem:[%s1173_s11 + $0x20] sm:$0xff] %v1205_v4 }
 0x172 PF: > { %p12_p8 = scmp.ge.s32.totalorder %s1620_s22, 6   ;;  %s1836_s18 = smov %s1567_s19 }
 0x173   : > { %s1837_s19 = smov %s1628_s25  ;;  %s1838_s20 = smov %s1620_s22 }
 0x174   :  { %14 = sbr.rel (!%p12_p8) target bundleno = 2 (0x2), region = 114 }

</bundles_post_ra>
